<compile_context>
chip_gen: v5e
topology: v5e:2x2
jax: 0.10.0
libtpu: 0.0.40
codegen_flags: <defaults>
</compile_context>

<pallas_src>
import jax
import jax.numpy as jnp
from jax.experimental import pallas as pl
from jax.experimental.pallas import tpu as pltpu

# ---- module hyper-parameters (InferLoss_base defaults) ----
K_CE, K_L1, K_GIOU = 1.0, 5.0, 2.0
N_CLASS = 2          # n_class
VOID_IDX = 0         # void_class_idx
VOID_W = 0.1         # void_class_weight
GIOU_EPS = 1e-7      # torchvision generalized_box_iou_loss eps


def infer_loss_kernel(labidx_ref,   # [B, 2] int32: (:,0)=label, (:,1)=matched query idx
                      logits_ref,   # [C=2, B, N]  lane-dense in N
                      boxes_ref,    # [4,   B, N]  cxcywh coordinate planes
                      tgt_ref,      # [B, 4]       xyxy targets
                      out_ref):     # [1, 1]       per-evaluation scalar loss
    C, B, N = logits_ref.shape

    # ---- matched-query mask from one small VMEM load (no serial scalar chain) ----
    li = labidx_ref[...]                          # [B, 2] int32
    lab_col = li[:, 0:1]                          # [B, 1]
    idx_col = li[:, 1:2]                          # [B, 1]
    n_iota = jax.lax.broadcasted_iota(jnp.int32, (B, N), 1)
    match = n_iota == idx_col                     # [B, N]

    # ---- weighted cross-entropy (C == 2 specialization, lane-dense [B, N]) ----
    l0 = logits_ref[0].astype(jnp.float32)        # logit of class 0 (void)
    l1 = logits_ref[1].astype(jnp.float32)        # logit of class 1
    lse = jnp.maximum(l0, l1) + jnp.log1p(jnp.exp(-jnp.abs(l0 - l1)))  # 2-class LSE (EUP)
    lbl = jnp.where(match, lab_col, VOID_IDX)     # target class per (b, n)
    picked = jnp.where(lbl == 1, l1, l0) - lse    # log p(target class)
    w = jnp.where(lbl == VOID_IDX, jnp.float32(VOID_W), jnp.float32(1.0))
    ce = jnp.sum(w * (-picked)) / jnp.sum(w)      # scalar divide: negligible

    # ---- fused matched-box gather: 1 multiply + 1 lane reduce on [4, B, N] ----
    match_f = match.astype(jnp.float32)
    sel = jnp.sum(boxes_ref[...].astype(jnp.float32) * match_f[None, :, :],
                  axis=-1, keepdims=True)         # [4, B, 1] (cx, cy, w, h)
    cx, cy, bw, bh = sel[0], sel[1], sel[2], sel[3]
    px1 = cx - 0.5 * bw
    py1 = cy - 0.5 * bh
    px2 = cx + 0.5 * bw
    py2 = cy + 0.5 * bh

    tgt = tgt_ref[...].astype(jnp.float32)        # [B, 4] xyxy
    gx1 = tgt[:, 0:1]
    gy1 = tgt[:, 1:2]
    gx2 = tgt[:, 2:3]
    gy2 = tgt[:, 3:4]

    # ---- L1 loss (mean over B*4 box coordinates) ----
    l1_loss = (jnp.sum(jnp.abs(px1 - gx1) + jnp.abs(py1 - gy1) +
                       jnp.abs(px2 - gx2) + jnp.abs(py2 - gy2))
               / jnp.float32(B * 4))

    # ---- GIoU loss (torchvision.ops.generalized_box_iou_loss, reduction='mean') ----
    xkis1 = jnp.maximum(px1, gx1)
    ykis1 = jnp.maximum(py1, gy1)
    xkis2 = jnp.minimum(px2, gx2)
    ykis2 = jnp.minimum(py2, gy2)
    inter = jnp.where((ykis2 > ykis1) & (xkis2 > xkis1),
                      (xkis2 - xkis1) * (ykis2 - ykis1), 0.0)
    union = (px2 - px1) * (py2 - py1) + (gx2 - gx1) * (gy2 - gy1) - inter
    iou = inter * pl.reciprocal(union + GIOU_EPS, approx=True)          # EUP rcp

    xc1 = jnp.minimum(px1, gx1)
    yc1 = jnp.minimum(py1, gy1)
    xc2 = jnp.maximum(px2, gx2)
    yc2 = jnp.maximum(py2, gy2)
    area_c = (xc2 - xc1) * (yc2 - yc1)
    miou = iou - (area_c - union) * pl.reciprocal(area_c + GIOU_EPS, approx=True)
    giou_loss = jnp.sum(1.0 - miou) / jnp.float32(B)

    loss = K_CE * ce + K_L1 * l1_loss + K_GIOU * giou_loss
    out_ref[...] = jnp.full((1, 1), loss, jnp.float32)


def infer_loss_batched(pred_logits, pred_boxes, tgt_boxes, labels, indexes):
    """Batched InferLoss_base. Leading axis L = independent loss evaluations
    (e.g. decoder layers / denoise groups / matcher calls).

    pred_logits [L,B,N,C] (C==2), pred_boxes [L,B,N,4] cxcywh,
    tgt_boxes [L,B,1,4] xyxy, labels [L,B,1] int, indexes [L,B,1] int
    -> losses [L] float32."""
    L, B, N, C = pred_logits.shape
    assert C == N_CLASS == 2, "kernel specialized for module default n_class=2"

    # Lane-dense re-layout (layout plumbing, fusable into the pallas_call):
    # N sits on the lane (last) axis. Native dtype is DMA'd; upcast in-kernel.
    logits_t = jnp.transpose(pred_logits, (0, 3, 1, 2))   # [L, C, B, N]
    boxes_t = jnp.transpose(pred_boxes, (0, 3, 1, 2))     # [L, 4, B, N]
    tgt = tgt_boxes.reshape(L, B, 4)
    lab = labels.reshape(L, B).astype(jnp.int32)
    # Matcher indices are always in [0, N); clamp so an out-of-range index
    # cannot silently select an all-zero "matched" box (guard, documented).
    idx = jnp.clip(indexes.reshape(L, B).astype(jnp.int32), 0, N - 1)
    lab_idx = jnp.stack([lab, idx], axis=-1)               # [L, B, 2] int32

    out = pl.pallas_call(
        infer_loss_kernel,
        out_shape=jax.ShapeDtypeStruct((L, 1, 1), jnp.float32),
        grid=(L,),
        in_specs=[
            pl.BlockSpec((None, B, 2), lambda l: (l, 0, 0)),
            pl.BlockSpec((None, C, B, N), lambda l: (l, 0, 0, 0)),
            pl.BlockSpec((None, 4, B, N), lambda l: (l, 0, 0, 0)),
            pl.BlockSpec((None, B, 4), lambda l: (l, 0, 0)),
        ],
        out_specs=pl.BlockSpec((None, 1, 1), lambda l: (l, 0, 0)),
        compiler_params=pltpu.CompilerParams(
            dimension_semantics=("parallel",),              # 2x on v7x's 2 TCs
            allow_input_fusion=[True, True, True, True],    # fuse wrapper transposes
        ),
    )(lab_idx, logits_t, boxes_t, tgt)
    return out.reshape(L)


def infer_loss(pred_logits, pred_boxes, tgt_boxes, labels, indexes):
    """Single-evaluation convenience wrapper (adds a leading L=1 axis)."""
    return infer_loss_batched(pred_logits[None], pred_boxes[None],
                              tgt_boxes[None], labels[None], indexes[None])[0]


def infer_loss_ref(pred_logits, pred_boxes, tgt_boxes, labels, indexes):
    """Pure-JAX reference mirroring the PyTorch InferLoss_base forward (unbatched)."""
    B, N, C = pred_logits.shape
    lab = labels.reshape(B).astype(jnp.int32)
    idx = indexes.reshape(B).astype(jnp.int32)
    tgt = tgt_boxes.reshape(B, 4).astype(jnp.float32)

    lbl_bn = jnp.where(jnp.arange(N)[None, :] == idx[:, None], lab[:, None], VOID_IDX)
    logp = jax.nn.log_softmax(pred_logits.astype(jnp.float32), axis=-1)
    picked = jnp.take_along_axis(logp, lbl_bn[:, :, None], axis=-1)[..., 0]
    w = jnp.where(lbl_bn == VOID_IDX, VOID_W, 1.0)
    ce = jnp.sum(w * (-picked)) / jnp.sum(w)

    psel = pred_boxes[jnp.arange(B), idx].astype(jnp.float32)  # cxcywh
    pxyxy = jnp.stack([psel[:, 0] - 0.5 * psel[:, 2], psel[:, 1] - 0.5 * psel[:, 3],
                       psel[:, 0] + 0.5 * psel[:, 2], psel[:, 1] + 0.5 * psel[:, 3]], -1)
    l1 = jnp.mean(jnp.abs(pxyxy - tgt))

    xk1 = jnp.maximum(pxyxy[:, 0], tgt[:, 0]); yk1 = jnp.maximum(pxyxy[:, 1], tgt[:, 1])
    xk2 = jnp.minimum(pxyxy[:, 2], tgt[:, 2]); yk2 = jnp.minimum(pxyxy[:, 3], tgt[:, 3])
    inter = jnp.where((yk2 > yk1) & (xk2 > xk1), (xk2 - xk1) * (yk2 - yk1), 0.0)
    union = ((pxyxy[:, 2] - pxyxy[:, 0]) * (pxyxy[:, 3] - pxyxy[:, 1]) +
             (tgt[:, 2] - tgt[:, 0]) * (tgt[:, 3] - tgt[:, 1]) - inter)
    iou = inter / (union + GIOU_EPS)
    xc1 = jnp.minimum(pxyxy[:, 0], tgt[:, 0]); yc1 = jnp.minimum(pxyxy[:, 1], tgt[:, 1])
    xc2 = jnp.maximum(pxyxy[:, 2], tgt[:, 2]); yc2 = jnp.maximum(pxyxy[:, 3], tgt[:, 3])
    area_c = (xc2 - xc1) * (yc2 - yc1)
    giou = jnp.mean(1.0 - (iou - (area_c - union) / (area_c + GIOU_EPS)))
    return K_CE * ce + K_L1 * l1 + K_GIOU * giou


if __name__ == "__main__":
    # L independent loss evaluations (e.g. 6 decoder layers) batched in one call.
    L, B, N, C = 6, 4, 8, N_CLASS
    key = jax.random.PRNGKey(0)
    k1, k2, k3, k4, k5 = jax.random.split(key, 5)

    pred_logits = jax.random.normal(k1, (L, B, N, C), dtype=jnp.float32)
    # predicted boxes in (cx, cy, w, h) in (0, 1)
    pred_boxes = jax.nn.sigmoid(jax.random.normal(k2, (L, B, N, 4), dtype=jnp.float32))
    # target boxes: valid xyxy built from a random cxcywh
    t = jax.nn.sigmoid(jax.random.normal(k3, (L, B, 4), dtype=jnp.float32))
    tgt_boxes = jnp.stack(
        [t[..., 0] - 0.5 * t[..., 2], t[..., 1] - 0.5 * t[..., 3],
         t[..., 0] + 0.5 * t[..., 2], t[..., 1] + 0.5 * t[..., 3]],
        axis=-1).reshape(L, B, 1, 4)
    labels = jax.random.randint(k4, (L, B, 1), 0, C, dtype=jnp.int32)
    indexes = jax.random.randint(k5, (L, B, 1), 0, N, dtype=jnp.int32)

    losses = infer_loss_batched(pred_logits, pred_boxes, tgt_boxes, labels, indexes)
    jax.block_until_ready(losses)

    ref = jax.vmap(infer_loss_ref)(pred_logits, pred_boxes, tgt_boxes, labels, indexes)
    assert losses.shape == (L,)
    assert bool(jnp.all(jnp.isfinite(losses))), "non-finite loss"
    # Tolerance relaxed slightly because of the approx EUP reciprocals in GIoU.
    assert jnp.allclose(losses, ref, atol=5e-3, rtol=5e-3), (losses, ref)

    single = infer_loss(pred_logits[0], pred_boxes[0], tgt_boxes[0],
                        labels[0], indexes[0])
    jax.block_until_ready(single)
    assert jnp.allclose(single, ref[0], atol=5e-3, rtol=5e-3), (single, ref[0])

    print("KERNEL_OK")
</pallas_src>

<mosaic_0001>
module attributes {stable_mosaic.version = 11 : i64} {
  func.func @infer_loss_kernel(%arg0: i32, %arg1: memref<1x4x2xi32, #tpu.memory_space<vmem>>, %arg2: memref<1x2x4x8xf32, #tpu.memory_space<vmem>>, %arg3: memref<1x4x4x8xf32, #tpu.memory_space<vmem>>, %arg4: memref<1x4x4xf32, #tpu.memory_space<vmem>>, %arg5: memref<1x1x1xf32, #tpu.memory_space<vmem>>) attributes {dimension_semantics = [#tpu.dimension_semantics<parallel>], iteration_bounds = array<i64: 6>, scalar_prefetch = 0 : i64, scratch_operands = 0 : i64, tpu.core_type = #tpu.core_type<tc>, window_params = [{transform_indices = @transform_0, window_bounds = array<i64: 1, 4, 2>}, {transform_indices = @transform_1, window_bounds = array<i64: 1, 2, 4, 8>}, {transform_indices = @transform_2, window_bounds = array<i64: 1, 4, 4, 8>}, {transform_indices = @transform_3, window_bounds = array<i64: 1, 4, 4>}, {transform_indices = @transform_4, window_bounds = array<i64: 1, 1, 1>}]} {
    %c0 = arith.constant 0 : index
    %c0_0 = arith.constant 0 : index
    %c0_1 = arith.constant 0 : index
    %0 = vector.load %arg1[%c0, %c0_0, %c0_1] : memref<1x4x2xi32, #tpu.memory_space<vmem>>, vector<1x4x2xi32>
    %1 = vector.shape_cast %0 : vector<1x4x2xi32> to vector<4x2xi32>
    %2 = vector.extract_strided_slice %1 {offsets = [0, 0], sizes = [4, 1], strides = [1, 1]} : vector<4x2xi32> to vector<4x1xi32>
    %3 = vector.extract_strided_slice %1 {offsets = [0, 1], sizes = [4, 1], strides = [1, 1]} : vector<4x2xi32> to vector<4x1xi32>
    %4 = tpu.iota {dimensions = array<i32: 1>} : vector<4x8xi32>
    %5 = vector.broadcast %3 : vector<4x1xi32> to vector<4x8xi32>
    %6 = arith.cmpi eq, %4, %5 : vector<4x8xi32>
    %c0_2 = arith.constant 0 : index
    %c0_3 = arith.constant 0 : index
    %c0_4 = arith.constant 0 : index
    %c0_5 = arith.constant 0 : index
    %7 = vector.load %arg2[%c0_2, %c0_3, %c0_4, %c0_5] : memref<1x2x4x8xf32, #tpu.memory_space<vmem>>, vector<1x1x4x8xf32>
    %8 = vector.shape_cast %7 : vector<1x1x4x8xf32> to vector<4x8xf32>
    %c0_6 = arith.constant 0 : index
    %c1 = arith.constant 1 : index
    %c0_7 = arith.constant 0 : index
    %c0_8 = arith.constant 0 : index
    %9 = vector.load %arg2[%c0_6, %c1, %c0_7, %c0_8] : memref<1x2x4x8xf32, #tpu.memory_space<vmem>>, vector<1x1x4x8xf32>
    %10 = vector.shape_cast %9 : vector<1x1x4x8xf32> to vector<4x8xf32>
    %11 = arith.maximumf %8, %10 : vector<4x8xf32>
    %12 = arith.subf %8, %10 : vector<4x8xf32>
    %13 = math.absf %12 : vector<4x8xf32>
    %cst = arith.constant 0.000000e+00 : f32
    %14 = vector.broadcast %cst : f32 to vector<4x8xf32>
    %15 = arith.subf %14, %13 : vector<4x8xf32>
    %16 = math.exp %15 : vector<4x8xf32>
    %17 = math.log1p %16 : vector<4x8xf32>
    %18 = arith.addf %11, %17 : vector<4x8xf32>
    %c0_i32 = arith.constant 0 : i32
    %19 = vector.shape_cast %2 : vector<4x1xi32> to vector<4x1xi32>
    %20 = vector.broadcast %19 : vector<4x1xi32> to vector<4x8xi32>
    %21 = vector.broadcast %c0_i32 : i32 to vector<4x8xi32>
    %22 = arith.select %6, %20, %21 : vector<4x8xi1>, vector<4x8xi32>
    %c1_i32 = arith.constant 1 : i32
    %23 = vector.broadcast %c1_i32 : i32 to vector<4x8xi32>
    %24 = arith.cmpi eq, %22, %23 : vector<4x8xi32>
    %25 = arith.select %24, %10, %8 : vector<4x8xi1>, vector<4x8xf32>
    %26 = arith.subf %25, %18 : vector<4x8xf32>
    %c0_i32_9 = arith.constant 0 : i32
    %27 = vector.broadcast %c0_i32_9 : i32 to vector<4x8xi32>
    %28 = arith.cmpi eq, %22, %27 : vector<4x8xi32>
    %cst_10 = arith.constant 1.000000e-01 : f32
    %cst_11 = arith.constant 1.000000e+00 : f32
    %29 = vector.broadcast %cst_10 : f32 to vector<4x8xf32>
    %30 = vector.broadcast %cst_11 : f32 to vector<4x8xf32>
    %31 = arith.select %28, %29, %30 : vector<4x8xi1>, vector<4x8xf32>
    %cst_12 = arith.constant 0.000000e+00 : f32
    %32 = vector.broadcast %cst_12 : f32 to vector<4x8xf32>
    %33 = arith.subf %32, %26 : vector<4x8xf32>
    %34 = arith.mulf %31, %33 : vector<4x8xf32>
    %35 = vector.shape_cast %34 : vector<4x8xf32> to vector<1x4x8xf32>
    %cst_13 = arith.constant dense<0.000000e+00> : vector<1xf32>
    %36 = vector.multi_reduction <add>, %35, %cst_13 [1, 2] : vector<1x4x8xf32> to vector<1xf32>
    %37 = vector.shape_cast %36 : vector<1xf32> to vector<1x1x1xf32>
    %38 = vector.extract %37[0, 0, 0] : f32 from vector<1x1x1xf32>
    %39 = vector.shape_cast %31 : vector<4x8xf32> to vector<1x4x8xf32>
    %cst_14 = arith.constant dense<0.000000e+00> : vector<1xf32>
    %40 = vector.multi_reduction <add>, %39, %cst_14 [1, 2] : vector<1x4x8xf32> to vector<1xf32>
    %41 = vector.shape_cast %40 : vector<1xf32> to vector<1x1x1xf32>
    %42 = vector.extract %41[0, 0, 0] : f32 from vector<1x1x1xf32>
    %43 = arith.divf %38, %42 : f32
    %44 = arith.extui %6 : vector<4x8xi1> to vector<4x8xi32>
    %45 = arith.sitofp %44 : vector<4x8xi32> to vector<4x8xf32>
    %c0_15 = arith.constant 0 : index
    %c0_16 = arith.constant 0 : index
    %c0_17 = arith.constant 0 : index
    %c0_18 = arith.constant 0 : index
    %46 = vector.load %arg3[%c0_15, %c0_16, %c0_17, %c0_18] : memref<1x4x4x8xf32, #tpu.memory_space<vmem>>, vector<1x4x4x8xf32>
    %47 = vector.shape_cast %46 : vector<1x4x4x8xf32> to vector<4x4x8xf32>
    %48 = vector.shape_cast %45 : vector<4x8xf32> to vector<1x4x8xf32>
    %49 = vector.broadcast %48 : vector<1x4x8xf32> to vector<4x4x8xf32>
    %50 = arith.mulf %47, %49 : vector<4x4x8xf32>
    %cst_19 = arith.constant dense<0.000000e+00> : vector<4x4xf32>
    %51 = vector.multi_reduction <add>, %50, %cst_19 [2] : vector<4x4x8xf32> to vector<4x4xf32>
    %52 = vector.shape_cast %51 : vector<4x4xf32> to vector<4x4x1xf32>
    %53 = vector.extract_strided_slice %52 {offsets = [0, 0, 0], sizes = [1, 4, 1], strides = [1, 1, 1]} : vector<4x4x1xf32> to vector<1x4x1xf32>
    %54 = vector.shape_cast %53 : vector<1x4x1xf32> to vector<4x1xf32>
    %55 = vector.extract_strided_slice %52 {offsets = [1, 0, 0], sizes = [1, 4, 1], strides = [1, 1, 1]} : vector<4x4x1xf32> to vector<1x4x1xf32>
    %56 = vector.shape_cast %55 : vector<1x4x1xf32> to vector<4x1xf32>
    %57 = vector.extract_strided_slice %52 {offsets = [2, 0, 0], sizes = [1, 4, 1], strides = [1, 1, 1]} : vector<4x4x1xf32> to vector<1x4x1xf32>
    %58 = vector.shape_cast %57 : vector<1x4x1xf32> to vector<4x1xf32>
    %59 = vector.extract_strided_slice %52 {offsets = [3, 0, 0], sizes = [1, 4, 1], strides = [1, 1, 1]} : vector<4x4x1xf32> to vector<1x4x1xf32>
    %60 = vector.shape_cast %59 : vector<1x4x1xf32> to vector<4x1xf32>
    %cst_20 = arith.constant 5.000000e-01 : f32
    %61 = vector.broadcast %cst_20 : f32 to vector<4x1xf32>
    %62 = arith.mulf %61, %58 : vector<4x1xf32>
    %63 = arith.subf %54, %62 : vector<4x1xf32>
    %cst_21 = arith.constant 5.000000e-01 : f32
    %64 = vector.broadcast %cst_21 : f32 to vector<4x1xf32>
    %65 = arith.mulf %64, %60 : vector<4x1xf32>
    %66 = arith.subf %56, %65 : vector<4x1xf32>
    %cst_22 = arith.constant 5.000000e-01 : f32
    %67 = vector.broadcast %cst_22 : f32 to vector<4x1xf32>
    %68 = arith.mulf %67, %58 : vector<4x1xf32>
    %69 = arith.addf %54, %68 : vector<4x1xf32>
    %cst_23 = arith.constant 5.000000e-01 : f32
    %70 = vector.broadcast %cst_23 : f32 to vector<4x1xf32>
    %71 = arith.mulf %70, %60 : vector<4x1xf32>
    %72 = arith.addf %56, %71 : vector<4x1xf32>
    %c0_24 = arith.constant 0 : index
    %c0_25 = arith.constant 0 : index
    %c0_26 = arith.constant 0 : index
    %73 = vector.load %arg4[%c0_24, %c0_25, %c0_26] : memref<1x4x4xf32, #tpu.memory_space<vmem>>, vector<1x4x4xf32>
    %74 = vector.shape_cast %73 : vector<1x4x4xf32> to vector<4x4xf32>
    %75 = vector.extract_strided_slice %74 {offsets = [0, 0], sizes = [4, 1], strides = [1, 1]} : vector<4x4xf32> to vector<4x1xf32>
    %76 = vector.extract_strided_slice %74 {offsets = [0, 1], sizes = [4, 1], strides = [1, 1]} : vector<4x4xf32> to vector<4x1xf32>
    %77 = vector.extract_strided_slice %74 {offsets = [0, 2], sizes = [4, 1], strides = [1, 1]} : vector<4x4xf32> to vector<4x1xf32>
    %78 = vector.extract_strided_slice %74 {offsets = [0, 3], sizes = [4, 1], strides = [1, 1]} : vector<4x4xf32> to vector<4x1xf32>
    %79 = arith.subf %63, %75 : vector<4x1xf32>
    %80 = math.absf %79 : vector<4x1xf32>
    %81 = arith.subf %66, %76 : vector<4x1xf32>
    %82 = math.absf %81 : vector<4x1xf32>
    %83 = arith.addf %80, %82 : vector<4x1xf32>
    %84 = arith.subf %69, %77 : vector<4x1xf32>
    %85 = math.absf %84 : vector<4x1xf32>
    %86 = arith.addf %83, %85 : vector<4x1xf32>
    %87 = arith.subf %72, %78 : vector<4x1xf32>
    %88 = math.absf %87 : vector<4x1xf32>
    %89 = arith.addf %86, %88 : vector<4x1xf32>
    %90 = vector.shape_cast %89 : vector<4x1xf32> to vector<1x4x1xf32>
    %cst_27 = arith.constant dense<0.000000e+00> : vector<1xf32>
    %91 = vector.multi_reduction <add>, %90, %cst_27 [1, 2] : vector<1x4x1xf32> to vector<1xf32>
    %92 = vector.shape_cast %91 : vector<1xf32> to vector<1x1x1xf32>
    %93 = vector.extract %92[0, 0, 0] : f32 from vector<1x1x1xf32>
    %cst_28 = arith.constant 1.600000e+01 : f32
    %94 = arith.divf %93, %cst_28 : f32
    %95 = arith.maximumf %63, %75 : vector<4x1xf32>
    %96 = arith.maximumf %66, %76 : vector<4x1xf32>
    %97 = arith.minimumf %69, %77 : vector<4x1xf32>
    %98 = arith.minimumf %72, %78 : vector<4x1xf32>
    %99 = arith.cmpf ogt, %98, %96 : vector<4x1xf32>
    %100 = arith.cmpf ogt, %97, %95 : vector<4x1xf32>
    %101 = arith.andi %99, %100 : vector<4x1xi1>
    %102 = arith.subf %97, %95 : vector<4x1xf32>
    %103 = arith.subf %98, %96 : vector<4x1xf32>
    %104 = arith.mulf %102, %103 : vector<4x1xf32>
    %cst_29 = arith.constant 0.000000e+00 : f32
    %105 = vector.broadcast %cst_29 : f32 to vector<4x1xf32>
    %106 = arith.select %101, %104, %105 : vector<4x1xi1>, vector<4x1xf32>
    %107 = arith.subf %69, %63 : vector<4x1xf32>
    %108 = arith.subf %72, %66 : vector<4x1xf32>
    %109 = arith.mulf %107, %108 : vector<4x1xf32>
    %110 = arith.subf %77, %75 : vector<4x1xf32>
    %111 = arith.subf %78, %76 : vector<4x1xf32>
    %112 = arith.mulf %110, %111 : vector<4x1xf32>
    %113 = arith.addf %109, %112 : vector<4x1xf32>
    %114 = arith.subf %113, %106 : vector<4x1xf32>
    %cst_30 = arith.constant 1.000000e-07 : f32
    %115 = vector.broadcast %cst_30 : f32 to vector<4x1xf32>
    %116 = arith.addf %114, %115 : vector<4x1xf32>
    %117 = tpu.reciprocal %116 {approx = true} : vector<4x1xf32> -> vector<4x1xf32>
    %118 = arith.mulf %106, %117 : vector<4x1xf32>
    %119 = arith.minimumf %63, %75 : vector<4x1xf32>
    %120 = arith.minimumf %66, %76 : vector<4x1xf32>
    %121 = arith.maximumf %69, %77 : vector<4x1xf32>
    %122 = arith.maximumf %72, %78 : vector<4x1xf32>
    %123 = arith.subf %121, %119 : vector<4x1xf32>
    %124 = arith.subf %122, %120 : vector<4x1xf32>
    %125 = arith.mulf %123, %124 : vector<4x1xf32>
    %126 = arith.subf %125, %114 : vector<4x1xf32>
    %cst_31 = arith.constant 1.000000e-07 : f32
    %127 = vector.broadcast %cst_31 : f32 to vector<4x1xf32>
    %128 = arith.addf %125, %127 : vector<4x1xf32>
    %129 = tpu.reciprocal %128 {approx = true} : vector<4x1xf32> -> vector<4x1xf32>
    %130 = arith.mulf %126, %129 : vector<4x1xf32>
    %131 = arith.subf %118, %130 : vector<4x1xf32>
    %cst_32 = arith.constant 1.000000e+00 : f32
    %132 = vector.broadcast %cst_32 : f32 to vector<4x1xf32>
    %133 = arith.subf %132, %131 : vector<4x1xf32>
    %134 = vector.shape_cast %133 : vector<4x1xf32> to vector<1x4x1xf32>
    %cst_33 = arith.constant dense<0.000000e+00> : vector<1xf32>
    %135 = vector.multi_reduction <add>, %134, %cst_33 [1, 2] : vector<1x4x1xf32> to vector<1xf32>
    %136 = vector.shape_cast %135 : vector<1xf32> to vector<1x1x1xf32>
    %137 = vector.extract %136[0, 0, 0] : f32 from vector<1x1x1xf32>
    %cst_34 = arith.constant 4.000000e+00 : f32
    %138 = arith.divf %137, %cst_34 : f32
    %cst_35 = arith.constant 1.000000e+00 : f32
    %139 = arith.mulf %cst_35, %43 : f32
    %cst_36 = arith.constant 5.000000e+00 : f32
    %140 = arith.mulf %cst_36, %94 : f32
    %141 = arith.addf %139, %140 : f32
    %cst_37 = arith.constant 2.000000e+00 : f32
    %142 = arith.mulf %cst_37, %138 : f32
    %143 = arith.addf %141, %142 : f32
    %144 = vector.broadcast %143 : f32 to vector<1x1xf32>
    %c0_38 = arith.constant 0 : index
    %c0_39 = arith.constant 0 : index
    %c0_40 = arith.constant 0 : index
    %145 = vector.load %arg5[%c0_38, %c0_39, %c0_40] : memref<1x1x1xf32, #tpu.memory_space<vmem>>, vector<1x1x1xf32>
    %146 = vector.shape_cast %145 : vector<1x1x1xf32> to vector<1x1xf32>
    %147 = vector.shape_cast %144 : vector<1x1xf32> to vector<1x1x1xf32>
    tpu.vector_store %arg5[%c0_38, %c0_39, %c0_40], %147 {strides = array<i32>} : memref<1x1x1xf32, #tpu.memory_space<vmem>>, vector<1x1x1xf32>,
    return
  }
  func.func @transform_0(%arg0: i32) -> (i32, i32, i32) {
    %c0_i32 = arith.constant 0 : i32
    %c0_i32_0 = arith.constant 0 : i32
    %c0_i32_1 = arith.constant 0 : i32
    return %arg0, %c0_i32, %c0_i32_0 : i32, i32, i32
  }
  func.func @transform_1(%arg0: i32) -> (i32, i32, i32, i32) {
    %c0_i32 = arith.constant 0 : i32
    %c0_i32_0 = arith.constant 0 : i32
    %c0_i32_1 = arith.constant 0 : i32
    %c0_i32_2 = arith.constant 0 : i32
    return %arg0, %c0_i32, %c0_i32_0, %c0_i32_1 : i32, i32, i32, i32
  }
  func.func @transform_2(%arg0: i32) -> (i32, i32, i32, i32) {
    %c0_i32 = arith.constant 0 : i32
    %c0_i32_0 = arith.constant 0 : i32
    %c0_i32_1 = arith.constant 0 : i32
    %c0_i32_2 = arith.constant 0 : i32
    return %arg0, %c0_i32, %c0_i32_0, %c0_i32_1 : i32, i32, i32, i32
  }
  func.func @transform_3(%arg0: i32) -> (i32, i32, i32) {
    %c0_i32 = arith.constant 0 : i32
    %c0_i32_0 = arith.constant 0 : i32
    %c0_i32_1 = arith.constant 0 : i32
    return %arg0, %c0_i32, %c0_i32_0 : i32, i32, i32
  }
  func.func @transform_4(%arg0: i32) -> (i32, i32, i32) {
    %c0_i32 = arith.constant 0 : i32
    %c0_i32_0 = arith.constant 0 : i32
    %c0_i32_1 = arith.constant 0 : i32
    return %arg0, %c0_i32, %c0_i32_0 : i32, i32, i32
  }
}

</mosaic_0001>

<bundles_post_ra>
// kernel: tpu_custom_call.1
= control target key start
LH: loop header
LB: loop body
LE: loop exit
PB: predicated region body
PF: predicated region fallthrough
CT: control target
= control target key end

     0   :  { %9 = vsyncpa [#allocation3], 0  ;;  %s1020_s0 = inlined_call_operand.vmem [shape: s32[6,4,2], index: 0, kind: input, shape index: {}]   ;;  %s1021_s1 = inlined_call_operand.vmem [shape: f32[6,2,4,8], index: 1, kind: input, shape index: {}]   ;;  %s1022_s2 = inlined_call_operand.hbm [shape: f32[6,4,4,8], index: 2, kind: input, shape index: {}]   ;;  %s1023_s3 = inlined_call_operand.vmem [shape: f32[6,4,4], index: 3, kind: input, shape index: {}]   ;;  %s1024_s4 = inlined_call_operand.vmem [shape: f32[6,1,1], index: 4, kind: output, shape index: {}]  }
   0x1   :  { %11 = vsyncpa [#allocation3 + $0x1], 0  ;;  %s833_s15 = smov 0   ;;  %s835_s16 = smov 0  }
   0x2   :  { %s837_s17 = smov 0   ;;  %s839_s18 = smov 0  }
   0x3 LB: > { %s852_s19 = sadd.s32 4294967295, %s793_s18   ;;  %s855_s20 = sadd.s32 1, %s793_s18   ;;  %s793_s18 = sphi %s839_s18, %s1031_s18   ;;  %s789_s17 = sphi %s837_s17, %s1030_s17   ;;  %s785_s16 = sphi %s835_s16, %s1029_s16   ;;  %s781_s15 = sphi %s833_s15, %s1028_s15  }
   0x4   : > { %s73_s21 = ssub.s32 %s793_s18, %s855_s20  ;;  %s76_s22 = sadd.s32 1, %s789_s17 }
   0x5   : > { %p74_p0 = scmp.eq.s32.totalorder %s73_s21, 0  ;;  %p83_p1 = scmp.ne.s32.totalorder %s789_s17, %s785_s16 }
   0x6   : > { %p84_p2 = scmp.eq.s32.totalorder %s793_s18, 0  ;;  %p89_p3 = scmp.ne.s32.totalorder %s785_s16, %s781_s15 }
   0x7   : > { %s865_s23 = scalar_select %p74_p0, %s789_s17, %s76_s22  }
   0x8   : > { %p867_p4 = por %p84_p2, %p83_p1  ;;  %p90_p5 = scmp.eq.s32.totalorder %s852_s19, 0 }
   0x9   : > { %p666_p6 = scmp.lt.s32.totalorder %s793_s18, 6  ;;  %s180_s26 = sand.u32 1, %s789_s17  }
   0xa   : > { %p873_p7 = por %p90_p5, %p89_p3  ;;  %s631_s27 = sshll.u32 %s180_s26, 4 }
   0xb   : > { %s644_s28 = sshll.u32 %s793_s18, 4  ;;  %s184_s6 = scalar_lea.vmem [#allocation2], %s631_s27 }
   0xc   : > { %s189_s5 = scalar_lea.hbm %s1022_s2, %s644_s28  ;;  %s192_s7 = sshll.u32 %s184_s6, 4  ;;  %s193_s7 = int_to_ptr.vmem [resolvable:$true] %s192_s7 }
   0xd   : > { %s190_s8 = sshll.u32 %s189_s5, 4  ;;  %p884_p8 = pnand %p666_p6, %p867_p4  ;;  %s191_s8 = int_to_ptr.hbm [resolvable:$true] %s190_s8 }
   0xe   : > { %p634_p9 = scmp.ge.s32.totalorder %s793_s18, 1  ;;  %s181_s10 = scalar_lea.sflag [#allocation3], %s180_s26 }
   0xf   : > { %s729_s11 = sshra.s32 %s191_s8, 4  ;;  %p733_p11 = pneg %p884_p8  ;;  %s730_s11 = int_to_ptr.hbm [resolvable:$true] %s729_s11 }
  0x10   : > { %s731_s12 = scalar_lea.hbm %s730_s11, 16  ;;  %s736_s15 = scalar_lea.hbm %s1022_s2, 96 }
  0x11   : > { %p732_p10 = scmp.ne.s32.totalorder %s730_s11, %s731_s12  ;;  %p737_p0 = scmp.lt.s32.totalorder %s730_s11, %s1022_s2 }
  0x12   : > { %p738_p1 = scmp.lt.s32.totalorder %s736_s15, %s731_s12 }
  0x13   : > { %p734_p12 = pnand %p733_p11, %p732_p10 }
  0x14   : > { %p739_p2 = por %p738_p1, %p737_p0 }
  0x15   : > { %p735_p13 = pneg %p734_p12 }
  0x17   : > { %p740_p3 = pnand %p739_p2, %p735_p13 }
  0x19   : > { %743 = shalt.err (!%p740_p3)
}
  0x1a   : > { %s795_s24 = smov 64   ;;  %s796_s26 = smov 4  }
  0x1b   : > { %665 = dma.hbm_to_vmem [thread:$0]  (!%p884_p8), %s191_s8, 256, %s193_s7, %s181_s10, %s795_s24, %s795_s24, %s796_s26  }
  0x1c   : > { %p207_p4 = scmp.lt.s32.totalorder %s793_s18, 7 }
  0x1e   : > { %p208_p5 = pnand %p634_p9, %p207_p4 }
  0x1f   : > { %s213_s27 = sand.u32 (!%p208_p5), 1, %s785_s16  }
  0x20   : > { %211 = sbr.rel (%p208_p5) target bundleno = 1114 (0x45a), region = 36  ;;  %s635_s28 = sshll.u32 (!%p208_p5), %s213_s27, 4 }
  0x21   : > { %s214_s29 = scalar_lea.sflag (!%p208_p5), [#allocation3], %s213_s27  ;;  %s217_s30 = scalar_lea.vmem (!%p208_p5), [#allocation2], %s635_s28 }
  0x25   : > { %776 = dma.done.wait (%p873_p7), %s214_s29, 256  }
  0x26   : > { %778 = vsyncadd (%p873_p7), %s214_s29, 4294967040  ;;  %p254_p6 = scmp.lt.s32.totalorder %s852_s19, 5  ;;  %v797_v0 = vmov 1   ;;  %v271_v2 = vlaneseq  ;;  %v350_v5 = vld [vmem:[%s217_s30 + $0xc] sm:$0xf]  ;;  %v798_v8 = vmov 0.0  }
  0x27   : > { %712 = vset.pattern.permute.xlu0 %v797_v0  ;;  %v348_v6 = vld [vmem:[%s217_s30 + $0x4] sm:$0xf]  ;;  %v347_v7 = vld [vmem:[%s217_s30] sm:$0xf]  ;;  %vm307_vm1 = vcmask 60416   ;;  %s799_s10 = smov 2  }
  0x28   : > { %s1033_s19 = smov (!%p254_p6, %s852_s19), 5  ;;  %v918_v3 = vand.u32 127, %v271_v2  ;;  %v349_v16 = vld [vmem:[%s217_s30 + $0x8] sm:$0xf]  ;;  %v800_v38 = vmov 0   ;;  %s801_s11 = smov 127  }
  0x29   : > { %s636_s18 = sshll.u32 %s1033_s19, 2  ;;  %713 = vset.pattern.permute.xlu1 %v800_v38  ;;  %s802_s12 = smov 1   ;;  %vm397_vm9 = vcmask 3072  }
  0x2a   : > { %s257_s7 = scalar_lea.vmem %s1020_s0, %s636_s18  ;;  %s266_s9 = scalar_lea.vmem %s1023_s3, %s636_s18 }
  0x2b   : > { %v915_v1 = vld [vmem:[%s257_s7] sm:$0xf]  ;;  %s645_s13 = sshll.u32 %s1033_s19, 3  ;;  %s804_s22 = smov 126  }
  0x2c   : > { %274 = vperm.xlu0 %712, %v915_v1   ;;  %v934_v22 = vld [vmem:[%s266_s9] sm:$0xf]  ;;  %s262_s21 = scalar_lea.vmem %s1021_s1, %s645_s13  ;;  %s805_s24 = smov 125  }
  0x2d   : > { %v277_v55 = vld [vmem:[%s262_s21] sm:$0xf]  ;;  %v640_v56 = vld [vmem:[%s262_s21 + $0x4] sm:$0xf]  ;;  %s269_s13 = scalar_lea.vmem %s1024_s4, %s1033_s19 }
  0x2e   : > { %v281_v57 = vsub.f32 %v277_v55, %v640_v56 }
  0x30   : > { %v282_v58 = vand.u32 2147483647, %v281_v57 }
  0x32   : > { %v283_v59 = vsub.f32 0.0, %v282_v58 }
  0x34   : > { %714 = vset.pattern.permute.xlu0 %v800_v38  ;;  %v284_v60 = vmul.f32 1.442695, %v283_v59 }
  0x36   : > { %715 = vpow2.f32 %v284_v60 }
  0x3c   : > { %v716_v62 = vpop.eup %715 }
  0x9e   : > { %v920_v4 = vpop.permute.xlu0 %274 }
  0x9f   : > { %vm276_vm0 = vcmp.eq.s32.totalorder %v918_v3, %v920_v4 }
  0xa0   : > { %v641_v9 = vsel %vm276_vm0, 1.0, %v798_v8 }
  0xa1   : > { %v354_v10 = vmul.f32 %v641_v9, %v350_v5  ;;  %v352_v11 = vmul.f32 %v641_v9, %v348_v6  ;;  %v351_v12 = vmul.f32 %v641_v9, %v347_v7  ;;  %v353_v17 = vmul.f32 %v641_v9, %v349_v16 }
  0xa2   : > { %v289_v7 = vmul.f32 -0.5, %v716_v62 }
  0xa3   : > { %v364_v13 = vsel %vm307_vm1, %v354_v10, 0.0  ;;  %v358_v14 = vsel %vm307_vm1, %v352_v11, 0.0  ;;  %v355_v15 = vsel %vm307_vm1, %v351_v12, 0.0  ;;  %v361_v18 = vsel %vm307_vm1, %v353_v17, 0.0 }
  0xa4   : > { %365 = vadd.xlane.f32.xlu0 %v364_v13  ;;  %359 = vadd.xlane.f32.xlu1 %v358_v14  ;;  %v290_v10 = vadd.f32 1.0, %v289_v7  ;;  %v292_v12 = vand.u32 2147483647, %v716_v62 }
  0xa5   : > { %356 = vadd.xlane.f32.xlu2 %v355_v15 }
  0xa6   : > { %v291_v17 = vmul.f32 %v716_v62, %v290_v10  ;;  %vm293_vm6 = vcmp.lt.f32.partialorder %v292_v12, 0.0004427343 }
  0xac   : > { %362 = vadd.xlane.f32.xlu1 %v361_v18 }
 0x117   : > { %v366_v19 = vpop.xlane.xlu0 %365  ;;  %v360_v20 = vpop.xlane.xlu1 %359 }
 0x118   : > { %v369_v21 = vmul.f32 0.5, %v366_v19  ;;  %v357_v29 = vpop.xlane.xlu2 %356 }
 0x11a   : > { %v936_v23 = vsub.f32 %v360_v20, %v369_v21  ;;  %v938_v24 = vadd.f32 %v369_v21, %v360_v20  ;;  %v280_v21 = vmax.f32 %v277_v55, %v640_v56 }
 0x11c   : > { %v418_v25 = vmax.f32 %v936_v23, %v934_v22  ;;  %v449_v26 = vsub.f32 %v938_v24, %v936_v23  ;;  %v420_v35 = vmin.f32 %v938_v24, %v934_v22  ;;  %v475_v39 = vmin.f32 %v936_v23, %v934_v22 }
 0x11d   : > { %v477_v49 = vmax.f32 %v938_v24, %v934_v22 }
 0x11e   : > { %422 = vrot.lane.b32.xlu2 %v418_v25, %s799_s10 }
 0x11f   : > { %v363_v27 = vpop.xlane.xlu1 %362 }
 0x120   : > { %v367_v28 = vmul.f32 0.5, %v363_v27 }
 0x122   : > { %v944_v30 = vsub.f32 %v357_v29, %v367_v28  ;;  %v946_v31 = vadd.f32 %v367_v28, %v357_v29 }
 0x124   : > { %v417_v32 = vmax.f32 %v944_v30, %v934_v22  ;;  %v448_v33 = vsub.f32 %v946_v31, %v944_v30  ;;  %v474_v40 = vmin.f32 %v944_v30, %v934_v22  ;;  %v419_v41 = vmin.f32 %v946_v31, %v934_v22 }
 0x125   : > { %v476_v63 = vmax.f32 %v946_v31, %v934_v22  ;;  %v383_v3 = vsub.f32 %v946_v31, %v934_v22  ;;  %v374_v57 = vsub.f32 %v944_v30, %v934_v22 }
 0x126   : > { %427 = vrot.lane.b32.xlu1 %v417_v32, %s799_s10  ;;  %v952_v34 = vmul.f32 %v449_v26, %v448_v33  ;;  %v376_v32 = vsub.f32 %v936_v23, %v934_v22 }
 0x127   : > { %v384_v23 = vand.u32 2147483647, %v383_v3  ;;  %v375_v58 = vand.u32 2147483647, %v374_v57 }
 0x178   : > { %v423_v36 = vpop.permute.xlu2 %422 }
 0x179   : > { %v437_v37 = vsub.f32 %v420_v35, %v423_v36  ;;  %vm425_vm4 = vcmp.gt.f32.partialorder %v420_v35, %v423_v36  ;;  %v377_v36 = vand.u32 2147483647, %v376_v32 }
 0x17b   : > { %439 = vrot.lane.b32.xlu2 %v437_v37, %s801_s11 }
 0x183   : > { %452 = vrot.lane.b32.xlu2 %v934_v22, %s799_s10 }
 0x18b   : > { %484 = vrot.lane.b32.xlu2 %v475_v39, %s799_s10 }
 0x193   : > { %479 = vrot.lane.b32.xlu2 %v474_v40, %s799_s10 }
 0x198   : > { %v428_v42 = vpop.permute.xlu1 %427 }
 0x199   : > { %vm430_vm2 = vcmp.gt.f32.partialorder %v419_v41, %v428_v42  ;;  %v436_v44 = vsub.f32 %v419_v41, %v428_v42  ;;  %v390_v41 = vsub.f32 %v938_v24, %v934_v22 }
 0x19a   : > { %v431_v43 = vsel %vm430_vm2, 1, %v800_v38  ;;  %v803_v38 = vmov 1.0  }
 0x19b   : > { %432 = vrot.lane.b32.xlu1 %v431_v43, %s802_s12  ;;  %v391_v42 = vand.u32 2147483647, %v390_v41 }
 0x1d5   : > { %v440_v45 = vpop.permute.xlu2 %439 }
 0x1d6   : > { %v442_v46 = vmul.f32 %v440_v45, %v436_v44 }
 0x1d8   : > { %444 = vrot.lane.b32.xlu1 %v442_v46, %s802_s12 }
 0x1dd   : > { %v453_v47 = vpop.permute.xlu2 %452 }
 0x1de   : > { %v455_v48 = vsub.f32 %v934_v22, %v453_v47 }
 0x1e0   : > { %457 = vrot.lane.b32.xlu0 %v455_v48, %s801_s11 }
 0x1e5   : > { %v485_v50 = vpop.permute.xlu2 %484 }
 0x1e6   : > { %v487_v51 = vsub.f32 %v477_v49, %v485_v50 }
 0x1e8   : > { %489 = vrot.lane.b32.xlu2 %v487_v51, %s801_s11 }
 0x1ed   : > { %v480_v61 = vpop.permute.xlu2 %479 }
 0x1ee   : > { %v482_v2 = vsub.f32 %v476_v63, %v480_v61 }
 0x20d   : > { %v433_v52 = vpop.permute.xlu1 %432 }
 0x20e   : > { %vm434_vm3 = vcmp.ne.s32.totalorder %v433_v52, 0 }
 0x20f   : > { %vm435_vm5 = vmand %vm425_vm4, %vm434_vm3 }
 0x242   : > { %v490_v0 = vpop.permute.xlu2 %489 }
 0x243   : > { %v492_v5 = vmul.f32 %v490_v0, %v482_v2 }
 0x245   : > { %v494_v8 = vadd.f32 1e-07, %v492_v5 }
 0x24a   : > { %v445_v53 = vpop.permute.xlu1 %444 }
 0x24b   : > { %v971_v54 = vsel %vm435_vm5, %v445_v53, 0.0 }
 0x24c   : > { %463 = vrot.lane.b32.xlu1 %v971_v54, %s801_s11 }
 0x252   : > { %v458_v6 = vpop.permute.xlu0 %457 }
 0x253   : > { %v460_v9 = vmul.f32 %v458_v6, %v455_v48 }
 0x254   : > { %297 = vperm.xlu1 %713, %v915_v1   ;;  %v286_v1 = vadd.f32 1.0, %v716_v62 }
 0x255   : > { %v461_v13 = vadd.f32 %v460_v9, %v952_v34 }
 0x256   : > { %717 = vlog2.f32 %v286_v1 }
 0x257   : > { %719 = vrcp.f32 %v494_v8 }
 0x25c   : > { %v718_v11 = vpop.eup %717 }
 0x25d   : > { %v288_v16 = vmul.f32 0.6931472, %v718_v11  ;;  %v720_v20 = vpop.eup %719 }
 0x25f   : > { %v294_v26 = vsel %vm293_vm6, %v291_v17, %v288_v16 }
 0x260   : > { %v295_v27 = vadd.f32 %v294_v26, %v280_v21 }
 0x2be   : > { %v464_v14 = vpop.permute.xlu1 %463 }
 0x2bf   : > { %v466_v15 = vsub.f32 %v461_v13, %v464_v14 }
 0x2c1   : > { %v467_v18 = vadd.f32 1e-07, %v466_v15  ;;  %v493_v19 = vsub.f32 %v492_v5, %v466_v15 }
 0x2c3   : > { %721 = vrcp.f32 %v467_v18  ;;  %v496_v25 = vmul.f32 %v720_v20, %v493_v19  ;;  %v806_v19 = vmov 16.0  }
 0x2c5   : > { %498 = vrot.lane.b32.xlu2 %v496_v25, %s802_s12 }
 0x2c6   : > { %v298_v28 = vpop.permute.xlu1 %297 }
 0x2c7   : > { %v299_v29 = vsel %vm276_vm0, %v298_v28, 0  ;;  %vm531_vm0 = vcmask 0  }
 0x2c8   : > { %vm300_vm7 = vcmp.eq.s32.totalorder %v299_v29, 1  ;;  %vm303_vm8 = vcmp.eq.s32.totalorder %v299_v29, 0 }
 0x2c9   : > { %v722_v33 = vpop.eup %721  ;;  %v301_v34 = vsel %vm300_vm7, %v640_v56, %v277_v55  ;;  %v304_v39 = vsel %vm303_vm8, 0.1, %v803_v38  ;;  %v807_v38 = vmov 4.0  }
 0x2ca   : > { %v302_v35 = vsub.f32 %v301_v34, %v295_v27  ;;  %470 = vrot.lane.b32.xlu0 %v722_v33, %s802_s12  ;;  %v318_v43 = vsel %vm307_vm1, %v304_v39, 0.0 }
 0x2cc   : > { %v305_v37 = vsub.f32 0.0, %v302_v35 }
 0x2cd   : > { %379 = vrot.lane.b32.xlu2 %v377_v36, %s801_s11 }
 0x2ce   : > { %v306_v40 = vmul.f32 %v305_v37, %v304_v39 }
 0x2d0   : > { %v308_v4 = vsel %vm307_vm1, %v306_v40, 0.0 }
 0x2d1   : > { %309 = vadd.xlane.f32.xlu1 %v308_v4 }
 0x2d5   : > { %386 = vrot.lane.b32.xlu2 %v384_v23, %s804_s22 }
 0x2dd   : > { %393 = vrot.lane.b32.xlu2 %v391_v42, %s805_s24 }
 0x2f4   : > { %319 = vadd.xlane.f32.xlu0 %v318_v43 }
 0x31f   : > { %v499_v46 = vpop.permute.xlu2 %498 }
 0x327   : > { %v380_v55 = vpop.permute.xlu2 %379 }
 0x328   : > { %v382_v59 = vadd.f32 %v380_v55, %v375_v58 }
 0x32f   : > { %v387_v56 = vpop.permute.xlu2 %386 }
 0x330   : > { %v389_v60 = vadd.f32 %v387_v56, %v382_v59 }
 0x33c   : > { %v471_v44 = vpop.permute.xlu0 %470 }
 0x33d   : > { %v473_v45 = vmul.f32 %v471_v44, %v971_v54  ;;  %v394_v54 = vpop.permute.xlu2 %393 }
 0x33e   : > { %v396_v61 = vadd.f32 %v394_v54, %v389_v60 }
 0x33f   : > { %v501_v31 = vsub.f32 %v473_v45, %v499_v46 }
 0x340   : > { %v398_v2 = vsel %vm397_vm9, %v396_v61, 0.0 }
 0x341   : > { %v502_v47 = vsub.f32 1.0, %v501_v31 }
 0x343   : > { %504 = vrot.lane.b32.xlu2 %v502_v47, %s805_s24 }
 0x344   : > { %v310_v48 = vpop.xlane.xlu1 %309 }
 0x345   : > { %v311_v49 = vrot.slane %v310_v48, 4 }
 0x347   : > { %v312_v50 = vadd.f32 %v311_v49, %v310_v48 }
 0x349   : > { %v313_v51 = vrot.slane %v312_v50, 2 }
 0x34b   : > { %v314_v52 = vadd.f32 %v313_v51, %v312_v50 }
 0x34d   : > { %v315_v53 = vrot.slane %v314_v52, 1 }
 0x34f   : > { %v316_v24 = vadd.f32 %v315_v53, %v314_v52 }
 0x351   : > { %646 = vpush %v316_v24 }
 0x367   : > { %v320_v62 = vpop.xlane.xlu0 %319 }
 0x368   : > { %v321_v63 = vrot.slane %v320_v62, 4 }
 0x36a   : > { %v322_v0 = vadd.f32 %v321_v63, %v320_v62 }
 0x36c   : > { %v323_v1 = vrot.slane %v322_v0, 2  ;;  %399 = vadd.xlane.f32.xlu2 %v398_v2 }
 0x36e   : > { %v324_v5 = vadd.f32 %v323_v1, %v322_v0 }
 0x370   : > { %v325_v6 = vrot.slane %v324_v5, 1 }
 0x372   : > { %v326_v7 = vadd.f32 %v325_v6, %v324_v5 }
 0x374   : > { %648 = vpush %v326_v7 }
 0x382   : > { %s1000_s26 = spop %646 }
 0x39d   : > { %v505_v8 = vpop.permute.xlu2 %504 }
 0x39e   : > { %v507_v9 = vsel %vm397_vm9, %v505_v8, 0.0 }
 0x39f   : > { %508 = vadd.xlane.f32.xlu1 %v507_v9 }
 0x3a5   : > { %s649_s27 = spop %648 }
 0x3a6   : > { %v328_v22 = vstv %s649_s27 }
 0x3a7   : > { %723 = vrcp.f32 %v328_v22  ;;  %v340_v12 = vand.u32 2147483648, %v328_v22  ;;  %v338_v14 = vand.u32 2147483647, %v328_v22  ;;  %vm334_vm11 = vweird.f32 %v328_v22 }
 0x3a8   : > { %725 = vrcp.f32 %v806_v19 }
 0x3a9   : > { %v341_v16 = vor.u32 1.1754944e-38, %v340_v12  ;;  %vm339_vm13 = vcmp.eq.f32.partialorder %v338_v14, 8.507059e+37  ;;  %727 = vrcp.f32 %v807_v38 }
 0x3ad   : > { %v724_v30 = vpop.eup %723 }
 0x3ae   : > { %v330_v10 = vmul.f32 %v724_v30, %v328_v22  ;;  %vm335_vm10 = vweird.f32 %v724_v30  ;;  %v726_v20 = vpop.eup %725 }
 0x3af   : > { %vm336_vm12 = vmor %vm334_vm11, %vm335_vm10  ;;  %v409_v21 = vmul.f32 16.0, %v726_v20  ;;  %vm413_vm14 = vweird.f32 %v726_v20  ;;  %v728_v39 = vpop.eup %727 }
 0x3b0   : > { %v331_v11 = vsub.f32 1.0, %v330_v10  ;;  %v518_v40 = vmul.f32 4.0, %v728_v39  ;;  %vm522_vm15 = vweird.f32 %v728_v39 }
 0x3b1   : > { %v410_v25 = vsub.f32 1.0, %v409_v21 }
 0x3b2   : > { %v332_v13 = vmul.f32 %v724_v30, %v331_v11  ;;  %v519_v3 = vsub.f32 1.0, %v518_v40 }
 0x3b3   : > { %v411_v29 = vmul.f32 %v726_v20, %v410_v25 }
 0x3b4   : > { %v333_v15 = vadd.f32 %v724_v30, %v332_v13  ;;  %v520_v42 = vmul.f32 %v728_v39, %v519_v3 }
 0x3b5   : > { %v412_v34 = vadd.f32 %v726_v20, %v411_v29 }
 0x3b6   : > { %v337_v17 = vsel %vm336_vm12, %v724_v30, %v333_v15  ;;  %v521_v45 = vadd.f32 %v728_v39, %v520_v42 }
 0x3b7   : > { %v342_v18 = vsel %vm339_vm13, %v341_v16, %v337_v17  ;;  %v414_v37 = vsel %vm413_vm14, %v726_v20, %v412_v34 }
 0x3b8   : > { %650 = vpush %v342_v18  ;;  %v523_v47 = vsel %vm522_vm15, %v728_v39, %v521_v45 }
 0x3df   : > { %v400_v26 = vpop.xlane.xlu2 %399 }
 0x3e0   : > { %v401_v27 = vrot.slane %v400_v26, 4 }
 0x3e2   : > { %v402_v28 = vadd.f32 %v401_v27, %v400_v26 }
 0x3e4   : > { %v403_v32 = vrot.slane %v402_v28, 2 }
 0x3e6   : > { %v404_v33 = vadd.f32 %v403_v32, %v402_v28 }
 0x3e8   : > { %v405_v35 = vrot.slane %v404_v33, 1 }
 0x3e9   : > { %s651_s28 = spop %650 }
 0x3ea   : > { %v406_v36 = vadd.f32 %v405_v35, %v404_v33  ;;  %s344_s7 = smul.f32 %s651_s28, %s1000_s26 }
 0x3ec   : > { %652 = vpush %v406_v36 }
 0x3ed   : > { %654 = vpush %v414_v37 }
 0x412   : > { %v509_v4 = vpop.xlane.xlu1 %508 }
 0x413   : > { %v510_v23 = vrot.slane %v509_v4, 4 }
 0x415   : > { %v511_v41 = vadd.f32 %v510_v23, %v509_v4 }
 0x417   : > { %v512_v43 = vrot.slane %v511_v41, 2 }
 0x419   : > { %v513_v44 = vadd.f32 %v512_v43, %v511_v41 }
 0x41b   : > { %v514_v46 = vrot.slane %v513_v44, 1 }
 0x41d   : > { %v515_v31 = vadd.f32 %v514_v46, %v513_v44  ;;  %s653_s29 = spop %652 }
 0x41e   : > { %s655_s30 = spop %654 }
 0x41f   : > { %656 = vpush %v515_v31  ;;  %s416_s18 = smul.f32 %s655_s30, %s653_s29 }
 0x420   : > { %658 = vpush %v523_v47 }
 0x421   : > { %s526_s5 = smul.f32 5.0, %s416_s18 }
 0x423   : > { %s527_s9 = sadd.f32 %s526_s5, %s344_s7 }
 0x450   : > { %s657_s6 = spop %656 }
 0x451   : > { %s659_s25 = spop %658 }
 0x452   : > { %s525_s8 = smul.f32 %s659_s25, %s657_s6 }
 0x454   : > { %s528_s10 = smul.f32 2.0, %s525_s8 }
 0x456   : > { %s529_s14 = sadd.f32 %s528_s10, %s527_s9 }
 0x458   : > { %v530_v48 = vstv %s529_s14 }
 0x459   : > { %532 = vst.msk [vmem:[%s269_s13] sm:$0x1] %vm531_vm0, %v530_v48 }
 0x45a PF: > { %p14_p7 = scmp.ge.s32.totalorder %s855_s20, 8   ;;  %s1028_s15 = smov %s785_s16 }
 0x45b   : > { %s1029_s16 = smov %s789_s17  ;;  %s1030_s17 = smov %s865_s23 }
 0x45c   : > { %s1031_s18 = smov %s855_s20  ;;  %16 = sbr.rel (!%p14_p7) target bundleno = 3 (0x3), region = 86 }
 0x461   :  { %550 = vsyncpa [#allocation3], 1 }
 0x462   :  { %552 = vsyncpa [#allocation3 + $0x1], 1 }

</bundles_post_ra>
